<compile_context>
chip_gen: v7x
topology: tpu7x:2x2x1
jax: 0.10.0
libtpu: 0.0.40
codegen_flags: <defaults>
</compile_context>

<pallas_src>
import jax
import jax.numpy as jnp
from jax.experimental import pallas as pl
from jax.experimental.pallas import tpu as pltpu


def _round_up(x, m):
    return ((x + m - 1) // m) * m


def _cdiv(a, b):
    return (a + b - 1) // b


def mlp_kernel(x_ref, w1_ref, b1_ref, w2_ref, b2_ref, w3_ref, b3_ref, o_ref):
    # Transposed layout: (features, batch_tile); batch rides the lane axis.
    x = x_ref[...]                                   # (2, TB)
    w1 = w1_ref[...]                                 # (64, 2)

    # Layer 1: K=2 contraction as two VPU FMAs (don't waste an MXU push on K=2).
    h1 = w1[:, 0:1] * x[0:1, :] + w1[:, 1:2] * x[1:2, :] + b1_ref[...]   # (64, TB)
    h1 = jnp.maximum(h1, 0.0)

    # Layer 2: (128, 64) @ (64, TB) on the MXU, f32 accumulation.
    h2 = jnp.dot(w2_ref[...], h1, preferred_element_type=jnp.float32) + b2_ref[...]  # (128, TB)
    h2 = jnp.maximum(h2, 0.0)

    # Output head: (L8, 128) @ (128, TB) — only ceil(n_labels/8)*8 label rows, not 128.
    logits = jnp.dot(w3_ref[...], h2, preferred_element_type=jnp.float32) + b3_ref[...]  # (L8, TB)

    # EUP-friendly sigmoid: sigmoid(z) = 0.5 * (tanh(z / 2) + 1).
    o_ref[...] = (0.5 * (jnp.tanh(0.5 * logits) + 1.0)).astype(o_ref.dtype)


def multilabel_classifier(x, params, *, max_batch_tile=8192,
                          vmem_budget_bytes=12 * 1024 * 1024):
    """Forward pass.  x: (B, 2) f32; params in PyTorch layout; returns (B, n_labels) f32."""
    w1, b1, w2, b2, w3, b3 = params
    B = x.shape[0]
    n_labels, k3 = w3.shape
    assert x.shape[1] == 2 and w1.shape == (64, 2) and w2.shape == (128, 64) and k3 == 128

    # --- label padding: round n_labels up to a sublane multiple (8), NOT a lane (128) ---
    L8 = _round_up(n_labels, 8)
    if L8 != n_labels:
        w3 = jnp.pad(w3, ((0, L8 - n_labels), (0, 0)))
        b3 = jnp.pad(b3, ((0, L8 - n_labels),))
    b1c = b1.reshape(64, 1)
    b2c = b2.reshape(128, 1)
    b3c = b3.reshape(L8, 1)

    # --- batch tile selection -----------------------------------------------------
    # Per-step VMEM bytes per batch column: double-buffered x and out tiles plus f32
    # intermediates h1/h2/logits.  Budget kept under v5e's 16 MiB default scoped VMEM
    # (also fine for v6e/v7x 32 MiB defaults), so no vmem_limit override is needed.
    bytes_per_col = 4 * (2 * 2 + 2 * L8 + 64 + 128 + L8)
    tb_budget = max(128, (vmem_budget_bytes // bytes_per_col) // 128 * 128)

    B128 = _round_up(max(B, 1), 128)
    TB = max(128, (min(max_batch_tile, tb_budget, B128) // 128) * 128)
    # Keep >= 2 grid steps when the batch allows it so the "parallel" batch axis
    # can shard across both TensorCores on v7x.
    if B128 >= 256 and _cdiv(B128, TB) < 2:
        TB = _round_up(_cdiv(B128, 2), 128)

    B_pad = _round_up(B, TB)
    xT = x.T                                     # (2, B): batch on the lane axis
    if B_pad != B:
        xT = jnp.pad(xT, ((0, 0), (0, B_pad - B)))

    grid = (B_pad // TB,)

    # Advisory cost estimate for XLA scheduling around the custom call.
    flops = 2 * B_pad * (2 * 64 + 64 * 128 + 128 * L8)
    bytes_accessed = 4 * (
        B_pad * (2 + L8)                                   # x in, probabilities out
        + 64 * 2 + 64 + 128 * 64 + 128 + L8 * 128 + L8     # weights + biases
    )
    cost = pl.CostEstimate(flops=flops, transcendentals=B_pad * L8,
                           bytes_accessed=bytes_accessed)

    # Weights/biases: one full block, constant index_map -> VMEM-resident across steps.
    def resident(a):
        return pl.BlockSpec(a.shape, lambda i: (0,) * a.ndim)

    out = pl.pallas_call(
        mlp_kernel,
        # TODO(synk): emit bfloat16 here if downstream tolerates bf16 probabilities
        # (halves the dominant HBM write bytes); kept f32 to match the reference.
        out_shape=jax.ShapeDtypeStruct((L8, B_pad), jnp.float32),
        grid=grid,
        in_specs=[
            pl.BlockSpec((2, TB), lambda i: (0, i)),       # x: tiled over batch (lanes)
            resident(w1), resident(b1c),
            resident(w2), resident(b2c),
            resident(w3), resident(b3c),
        ],
        out_specs=pl.BlockSpec((L8, TB), lambda i: (0, i)),
        compiler_params=pltpu.CompilerParams(dimension_semantics=("parallel",)),
        cost_estimate=cost,
    )(xT, w1, b1c, w2, b2c, w3, b3c)

    # Tiny epilogue: (L8, B_pad) -> (B, n_labels).  At n_labels=10 this touches ~3%
    # of the bytes the old (B_pad, 128) slab slice did.
    return out[:n_labels, :B].T


def init_params(key, n_labels):
    # PyTorch nn.Linear layout: W (out, in), b (out,), uniform(-1/sqrt(fan_in), 1/sqrt(fan_in)).
    dims = [(64, 2), (128, 64), (n_labels, 128)]
    params = []
    for i, (fan_out, fan_in) in enumerate(dims):
        kw, kb = jax.random.split(jax.random.fold_in(key, i))
        bound = 1.0 / jnp.sqrt(float(fan_in))
        w = jax.random.uniform(kw, (fan_out, fan_in), jnp.float32, -bound, bound)
        b = jax.random.uniform(kb, (fan_out,), jnp.float32, -bound, bound)
        params += [w, b]
    return tuple(params)


def reference(x, params):
    w1, b1, w2, b2, w3, b3 = params
    h1 = jax.nn.relu(x @ w1.T + b1)
    h2 = jax.nn.relu(h1 @ w2.T + b2)
    return jax.nn.sigmoid(h2 @ w3.T + b3)


if __name__ == "__main__":
    key = jax.random.PRNGKey(0)
    n_labels = 10
    batch = 8
    kx, kp = jax.random.split(key)
    x = jax.random.normal(kx, (batch, 2), jnp.float32)
    params = init_params(kp, n_labels)

    out = multilabel_classifier(x, params)
    out = jax.block_until_ready(out)

    ref = reference(x, params)
    assert out.shape == (batch, n_labels), out.shape
    assert jnp.allclose(out, ref, atol=1e-5, rtol=1e-5), "mismatch vs reference"
    print("KERNEL_OK")
</pallas_src>

<mosaic_0001>
module attributes {stable_mosaic.version = 11 : i64} {
  func.func @mlp_kernel(%arg0: i32, %arg1: memref<2x128xf32, #tpu.memory_space<vmem>>, %arg2: memref<64x2xf32, #tpu.memory_space<vmem>>, %arg3: memref<64x1xf32, #tpu.memory_space<vmem>>, %arg4: memref<128x64xf32, #tpu.memory_space<vmem>>, %arg5: memref<128x1xf32, #tpu.memory_space<vmem>>, %arg6: memref<16x128xf32, #tpu.memory_space<vmem>>, %arg7: memref<16x1xf32, #tpu.memory_space<vmem>>, %arg8: memref<16x128xf32, #tpu.memory_space<vmem>>) attributes {dimension_semantics = [#tpu.dimension_semantics<parallel>], iteration_bounds = array<i64: 1>, scalar_prefetch = 0 : i64, scratch_operands = 0 : i64, tpu.core_type = #tpu.core_type<tc>, window_params = [{transform_indices = @transform_0, window_bounds = array<i64: 2, 128>}, {pipeline_mode = #tpu.pipeline_mode<synchronous>, transform_indices = @transform_1, window_bounds = array<i64: 64, 2>}, {pipeline_mode = #tpu.pipeline_mode<synchronous>, transform_indices = @transform_2, window_bounds = array<i64: 64, 1>}, {pipeline_mode = #tpu.pipeline_mode<synchronous>, transform_indices = @transform_3, window_bounds = array<i64: 128, 64>}, {pipeline_mode = #tpu.pipeline_mode<synchronous>, transform_indices = @transform_4, window_bounds = array<i64: 128, 1>}, {pipeline_mode = #tpu.pipeline_mode<synchronous>, transform_indices = @transform_5, window_bounds = array<i64: 16, 128>}, {pipeline_mode = #tpu.pipeline_mode<synchronous>, transform_indices = @transform_6, window_bounds = array<i64: 16, 1>}, {transform_indices = @transform_7, window_bounds = array<i64: 16, 128>}]} {
    %c0 = arith.constant 0 : index
    %c0_0 = arith.constant 0 : index
    %0 = vector.load %arg1[%c0, %c0_0] : memref<2x128xf32, #tpu.memory_space<vmem>>, vector<2x128xf32>
    %c0_1 = arith.constant 0 : index
    %c0_2 = arith.constant 0 : index
    %1 = vector.load %arg2[%c0_1, %c0_2] : memref<64x2xf32, #tpu.memory_space<vmem>>, vector<64x2xf32>
    %2 = vector.extract_strided_slice %1 {offsets = [0, 0], sizes = [64, 1], strides = [1, 1]} : vector<64x2xf32> to vector<64x1xf32>
    %3 = vector.extract_strided_slice %0 {offsets = [0, 0], sizes = [1, 128], strides = [1, 1]} : vector<2x128xf32> to vector<1x128xf32>
    %4 = vector.broadcast %2 : vector<64x1xf32> to vector<64x128xf32>
    %5 = vector.broadcast %3 : vector<1x128xf32> to vector<64x128xf32>
    %6 = arith.mulf %4, %5 : vector<64x128xf32>
    %7 = vector.extract_strided_slice %1 {offsets = [0, 1], sizes = [64, 1], strides = [1, 1]} : vector<64x2xf32> to vector<64x1xf32>
    %8 = vector.extract_strided_slice %0 {offsets = [1, 0], sizes = [1, 128], strides = [1, 1]} : vector<2x128xf32> to vector<1x128xf32>
    %9 = vector.broadcast %7 : vector<64x1xf32> to vector<64x128xf32>
    %10 = vector.broadcast %8 : vector<1x128xf32> to vector<64x128xf32>
    %11 = arith.mulf %9, %10 : vector<64x128xf32>
    %12 = arith.addf %6, %11 : vector<64x128xf32>
    %c0_3 = arith.constant 0 : index
    %c0_4 = arith.constant 0 : index
    %13 = vector.load %arg3[%c0_3, %c0_4] : memref<64x1xf32, #tpu.memory_space<vmem>>, vector<64x1xf32>
    %14 = vector.broadcast %13 : vector<64x1xf32> to vector<64x128xf32>
    %15 = arith.addf %12, %14 : vector<64x128xf32>
    %cst = arith.constant 0.000000e+00 : f32
    %16 = vector.broadcast %cst : f32 to vector<64x128xf32>
    %17 = arith.maximumf %15, %16 : vector<64x128xf32>
    %c0_5 = arith.constant 0 : index
    %c0_6 = arith.constant 0 : index
    %18 = vector.load %arg4[%c0_5, %c0_6] : memref<128x64xf32, #tpu.memory_space<vmem>>, vector<128x64xf32>
    %cst_7 = arith.constant dense<0.000000e+00> : vector<128x128xf32>
    %19 = tpu.matmul %18, %17, %cst_7 {dimension_numbers = #tpu.dot_dimension_numbers<[1], [0], [0], [1], [0, 0, 1, 1], [], []>} : vector<128x64xf32>, vector<64x128xf32>, vector<128x128xf32> -> vector<128x128xf32>
    %c0_8 = arith.constant 0 : index
    %c0_9 = arith.constant 0 : index
    %20 = vector.load %arg5[%c0_8, %c0_9] : memref<128x1xf32, #tpu.memory_space<vmem>>, vector<128x1xf32>
    %21 = vector.broadcast %20 : vector<128x1xf32> to vector<128x128xf32>
    %22 = arith.addf %19, %21 : vector<128x128xf32>
    %cst_10 = arith.constant 0.000000e+00 : f32
    %23 = vector.broadcast %cst_10 : f32 to vector<128x128xf32>
    %24 = arith.maximumf %22, %23 : vector<128x128xf32>
    %c0_11 = arith.constant 0 : index
    %c0_12 = arith.constant 0 : index
    %25 = vector.load %arg6[%c0_11, %c0_12] : memref<16x128xf32, #tpu.memory_space<vmem>>, vector<16x128xf32>
    %cst_13 = arith.constant dense<0.000000e+00> : vector<16x128xf32>
    %26 = tpu.matmul %25, %24, %cst_13 {dimension_numbers = #tpu.dot_dimension_numbers<[1], [0], [0], [1], [0, 0, 1, 1], [], []>} : vector<16x128xf32>, vector<128x128xf32>, vector<16x128xf32> -> vector<16x128xf32>
    %c0_14 = arith.constant 0 : index
    %c0_15 = arith.constant 0 : index
    %27 = vector.load %arg7[%c0_14, %c0_15] : memref<16x1xf32, #tpu.memory_space<vmem>>, vector<16x1xf32>
    %28 = vector.broadcast %27 : vector<16x1xf32> to vector<16x128xf32>
    %29 = arith.addf %26, %28 : vector<16x128xf32>
    %cst_16 = arith.constant 5.000000e-01 : f32
    %30 = vector.broadcast %cst_16 : f32 to vector<16x128xf32>
    %31 = arith.mulf %30, %29 : vector<16x128xf32>
    %32 = math.tanh %31 : vector<16x128xf32>
    %cst_17 = arith.constant 1.000000e+00 : f32
    %33 = vector.broadcast %cst_17 : f32 to vector<16x128xf32>
    %34 = arith.addf %32, %33 : vector<16x128xf32>
    %cst_18 = arith.constant 5.000000e-01 : f32
    %35 = vector.broadcast %cst_18 : f32 to vector<16x128xf32>
    %36 = arith.mulf %35, %34 : vector<16x128xf32>
    %c0_19 = arith.constant 0 : index
    %c0_20 = arith.constant 0 : index
    %37 = vector.load %arg8[%c0_19, %c0_20] : memref<16x128xf32, #tpu.memory_space<vmem>>, vector<16x128xf32>
    tpu.vector_store %arg8[%c0_19, %c0_20], %36 {strides = array<i32>} : memref<16x128xf32, #tpu.memory_space<vmem>>, vector<16x128xf32>,
    return
  }
  func.func @transform_0(%arg0: i32) -> (i32, i32) {
    %c0_i32 = arith.constant 0 : i32
    %c0_i32_0 = arith.constant 0 : i32
    return %c0_i32, %arg0 : i32, i32
  }
  func.func @transform_1(%arg0: i32) -> (i32, i32) {
    %c0_i32 = arith.constant 0 : i32
    %c0_i32_0 = arith.constant 0 : i32
    %c0_i32_1 = arith.constant 0 : i32
    return %c0_i32, %c0_i32_0 : i32, i32
  }
  func.func @transform_2(%arg0: i32) -> (i32, i32) {
    %c0_i32 = arith.constant 0 : i32
    %c0_i32_0 = arith.constant 0 : i32
    %c0_i32_1 = arith.constant 0 : i32
    return %c0_i32, %c0_i32_0 : i32, i32
  }
  func.func @transform_3(%arg0: i32) -> (i32, i32) {
    %c0_i32 = arith.constant 0 : i32
    %c0_i32_0 = arith.constant 0 : i32
    %c0_i32_1 = arith.constant 0 : i32
    return %c0_i32, %c0_i32_0 : i32, i32
  }
  func.func @transform_4(%arg0: i32) -> (i32, i32) {
    %c0_i32 = arith.constant 0 : i32
    %c0_i32_0 = arith.constant 0 : i32
    %c0_i32_1 = arith.constant 0 : i32
    return %c0_i32, %c0_i32_0 : i32, i32
  }
  func.func @transform_5(%arg0: i32) -> (i32, i32) {
    %c0_i32 = arith.constant 0 : i32
    %c0_i32_0 = arith.constant 0 : i32
    %c0_i32_1 = arith.constant 0 : i32
    return %c0_i32, %c0_i32_0 : i32, i32
  }
  func.func @transform_6(%arg0: i32) -> (i32, i32) {
    %c0_i32 = arith.constant 0 : i32
    %c0_i32_0 = arith.constant 0 : i32
    %c0_i32_1 = arith.constant 0 : i32
    return %c0_i32, %c0_i32_0 : i32, i32
  }
  func.func @transform_7(%arg0: i32) -> (i32, i32) {
    %c0_i32 = arith.constant 0 : i32
    %c0_i32_0 = arith.constant 0 : i32
    return %c0_i32, %arg0 : i32, i32
  }
}

</mosaic_0001>

<bundles_post_ra>
// kernel: tpu_custom_call.1
= control target key start
LH: loop header
LB: loop body
LE: loop exit
PB: predicated region body
PF: predicated region fallthrough
CT: control target
= control target key end

     0   :  { %v865_v2 = vmov 1   ;;  %v866_v7 = vmov 0   ;;  %s1097_s0 = inlined_call_operand.vmem [shape: f32[2,128], index: 0, kind: input, shape index: {}]   ;;  %s1098_s1 = inlined_call_operand.vmem [shape: f32[64,2], index: 1, kind: input, shape index: {}]   ;;  %s1099_s2 = inlined_call_operand.vmem [shape: f32[64,1], index: 2, kind: input, shape index: {}]   ;;  %s1100_s3 = inlined_call_operand.vmem [shape: f32[128,64], index: 3, kind: input, shape index: {}]   ;;  %s1101_s4 = inlined_call_operand.vmem [shape: f32[128,1], index: 4, kind: input, shape index: {}]   ;;  %s1102_s5 = inlined_call_operand.vmem [shape: f32[16,128], index: 5, kind: input, shape index: {}]   ;;  %s1103_s6 = inlined_call_operand.vmem [shape: f32[16,1], index: 6, kind: input, shape index: {}]   ;;  %s1104_s7 = inlined_call_operand.hbm [shape: f32[16,128], index: 7, kind: output, shape index: {}]  }
   0x1   :  { %v30_v0 = vld [vmem:[%s1098_s1 + $0x10] sm:$0xff]  ;;  %v28_v1 = vld [vmem:[%s1098_s1] sm:$0xff]  ;;  %829 = vset.pattern.permute.xlu0 %v865_v2  ;;  %827 = vset.pattern.permute.xlu1 %v865_v2  ;;  %v29_v4 = vld [vmem:[%s1098_s1 + $0x8] sm:$0xff] }
   0x2   :  { %97 = vperm.xlu0 %829, %v30_v0   ;;  %89 = vperm.xlu1 %827, %v28_v1   ;;  %v32_v3 = vld [vmem:[%s1098_s1 + $0x20] sm:$0xff]  ;;  %v34_v5 = vld [vmem:[%s1098_s1 + $0x30] sm:$0xff]  ;;  %v31_v6 = vld [vmem:[%s1098_s1 + $0x18] sm:$0xff] }
   0x6   :  { %105 = vperm.xlu0 %829, %v32_v3   ;;  %93 = vperm.xlu1 %827, %v29_v4  }
   0xa   :  { %113 = vperm.xlu0 %829, %v34_v5   ;;  %828 = vset.pattern.permute.xlu1 %v866_v7 }
   0xb   :  { %53 = vperm.xlu1 %828, %v31_v6  }
   0xc   :  { %12 = vsyncpa [#allocation3], 0  ;;  %v140_v8 = vld [vmem:[%s1099_s2] sm:$0xff]  ;;  %v141_v9 = vld [vmem:[%s1099_s2 + $0x8] sm:$0xff]  ;;  %vm316_vm0 = vcmask 523264   ;;  %v76_v39 = vlaneseq  ;;  %s867_s26 = smov [#allocation2]  }
   0xd   :  { %v33_v10 = vld [vmem:[%s1098_s1 + $0x28] sm:$0xff]  ;;  %v143_v11 = vld [vmem:[%s1099_s2 + $0x18] sm:$0xff]  ;;  %v220_v13 = vld [vmem:[%s1101_s4] sm:$0xff]  ;;  %s630_s27 = sshll.u32 %s867_s26, 4  ;;  %s631_s27 = int_to_ptr.vmem [resolvable:$true] %s630_s27 }
   0xe   :  { %834 = vset.pattern.permute.xlu0 %v866_v7  ;;  %v145_v12 = vld [vmem:[%s1099_s2 + $0x28] sm:$0xff]  ;;  %v142_v14 = vld [vmem:[%s1099_s2 + $0x10] sm:$0xff]  ;;  %v224_v16 = vld [vmem:[%s1101_s4 + $0x20] sm:$0xff]  ;;  %v77_v42 = vshrl.u32 %v76_v39, 7  ;;  %p846_p1 = scmp.lt.s32.totalorder %s631_s27, %s631_s27 }
   0xf   :  { %38 = vperm.xlu0 %834, %v28_v1   ;;  %830 = vset.pattern.permute.xlu1 %v865_v2  ;;  %v222_v15 = vld [vmem:[%s1101_s4 + $0x10] sm:$0xff]  ;;  %v35_v17 = vld [vmem:[%s1098_s1 + $0x38] sm:$0xff]  ;;  %v228_v19 = vld [vmem:[%s1101_s4 + $0x40] sm:$0xff] }
  0x10   :  { %101 = vperm.xlu1 %830, %v31_v6   ;;  %v226_v18 = vld [vmem:[%s1101_s4 + $0x30] sm:$0xff]  ;;  %v144_v20 = vld [vmem:[%s1099_s2 + $0x20] sm:$0xff]  ;;  %v147_v24 = vld [vmem:[%s1099_s2 + $0x38] sm:$0xff]  ;;  %v122_v45 = vsub.s32 1, %v77_v42  ;;  %v78_v46 = vsub.s32 0, %v77_v42 }
  0x11   :  { %v230_v21 = vld [vmem:[%s1101_s4 + $0x50] sm:$0xff]  ;;  %v232_v23 = vld [vmem:[%s1101_s4 + $0x60] sm:$0xff]  ;;  %v221_v26 = vld [vmem:[%s1101_s4 + $0x8] sm:$0xff] }
  0x12   :  { %v146_v22 = vld [vmem:[%s1099_s2 + $0x30] sm:$0xff]  ;;  %v528_v27 = vld [vmem:[%s1103_s6] sm:$0xff]  ;;  %v223_v28 = vld [vmem:[%s1101_s4 + $0x18] sm:$0xff] }
  0x13   :  { %43 = vperm.xlu0 %834, %v29_v4   ;;  %v234_v25 = vld [vmem:[%s1101_s4 + $0x70] sm:$0xff]  ;;  %v204_v29 = vld [vmem:[%s1100_s3] sm:$0xff]  ;;  %v225_v30 = vld [vmem:[%s1101_s4 + $0x28] sm:$0xff] }
  0x14   :  { %831 = vset.pattern.permute.xlu1 %v866_v7  ;;  %715 = vmatprep.mubr.msk.f32.mxu0 %vm316_vm0, %v204_v29  ;;  %v227_v31 = vld [vmem:[%s1101_s4 + $0x38] sm:$0xff]  ;;  %v229_v32 = vld [vmem:[%s1101_s4 + $0x48] sm:$0xff]  ;;  %v27_v47 = vld [vmem:[%s1097_s0] sm:$0x3] }
  0x15   :  { %150 = vperm.xlu1 %831, %v140_v8   ;;  %v231_v33 = vld [vmem:[%s1101_s4 + $0x58] sm:$0xff]  ;;  %v233_v34 = vld [vmem:[%s1101_s4 + $0x68] sm:$0xff]  ;;  %v123_v50 = vrot.slane %v27_v47, %v122_v45  ;;  %v79_v51 = vrot.slane %v27_v47, %v78_v46 }
  0x16   :  { %v235_v35 = vld [vmem:[%s1101_s4 + $0x78] sm:$0xff]  ;;  %v529_v36 = vld [vmem:[%s1103_s6 + $0x8] sm:$0xff] }
  0x17   :  { %48 = vperm.xlu0 %834, %v30_v0  }
  0x19   :  { %58 = vperm.xlu1 %831, %v32_v3  }
  0x1b   :  { %155 = vperm.xlu0 %834, %v141_v9  }
  0x1d   :  { %63 = vperm.xlu1 %831, %v33_v10  }
  0x1f   :  { %165 = vperm.xlu0 %834, %v143_v11  }
  0x21   :  { %832 = vset.pattern.permute.xlu1 %v865_v2 }
  0x22   :  { %109 = vperm.xlu1 %832, %v33_v10  }
  0x23   :  { %175 = vperm.xlu0 %834, %v145_v12  }
  0x26   :  { %833 = vset.pattern.permute.xlu1 %v866_v7 }
  0x27   :  { %238 = vperm.xlu0 %834, %v220_v13   ;;  %160 = vperm.xlu1 %833, %v142_v14  }
  0x2b   :  { %248 = vperm.xlu0 %834, %v222_v15   ;;  %68 = vperm.xlu1 %833, %v34_v5  }
  0x2f   :  { %258 = vperm.xlu0 %834, %v224_v16   ;;  %73 = vperm.xlu1 %833, %v35_v17  }
  0x33   :  { %268 = vperm.xlu0 %834, %v226_v18   ;;  %835 = vset.pattern.permute.xlu1 %v865_v2 }
  0x34   :  { %117 = vperm.xlu1 %835, %v35_v17  }
  0x37   :  { %278 = vperm.xlu0 %834, %v228_v19  }
  0x38   :  { %836 = vset.pattern.permute.xlu1 %v866_v7 }
  0x39   :  { %170 = vperm.xlu1 %836, %v144_v20  }
  0x3b   :  { %288 = vperm.xlu0 %834, %v230_v21  }
  0x3d   :  { %180 = vperm.xlu1 %836, %v146_v22  }
  0x3f   :  { %298 = vperm.xlu0 %834, %v232_v23  }
  0x41   :  { %185 = vperm.xlu1 %836, %v147_v24  }
  0x43   :  { %308 = vperm.xlu0 %834, %v234_v25  }
  0x45   :  { %243 = vperm.xlu1 %836, %v221_v26  }
  0x47   :  { %532 = vperm.xlu0 %834, %v528_v27  }
  0x49   :  { %253 = vperm.xlu1 %836, %v223_v28  }
  0x4d   :  { %263 = vperm.xlu1 %836, %v225_v30  }
  0x51   :  { %273 = vperm.xlu1 %836, %v227_v31  }
  0x55   :  { %283 = vperm.xlu1 %836, %v229_v32  }
  0x59   :  { %293 = vperm.xlu1 %836, %v231_v33  }
  0x5d   :  { %303 = vperm.xlu1 %836, %v233_v34  }
  0x61   :  { %313 = vperm.xlu1 %836, %v235_v35  }
  0x65   :  { %537 = vperm.xlu1 %836, %v529_v36  }
  0x81   :  { %v90_v37 = vpop.permute.xlu1 %89  ;;  %v98_v38 = vpop.permute.xlu0 %97 }
  0x82   :  { %v124_v55 = vmul.f32 %v123_v50, %v90_v37  ;;  %v126_v6 = vmul.f32 %v123_v50, %v98_v38 }
  0x85   :  { %v94_v40 = vpop.permute.xlu1 %93  ;;  %v106_v41 = vpop.permute.xlu0 %105 }
  0x86   :  { %v125_v58 = vmul.f32 %v123_v50, %v94_v40  ;;  %v128_v23 = vmul.f32 %v123_v50, %v106_v41 }
  0x89   :  { %v114_v43 = vpop.permute.xlu0 %113 }
  0x8a   :  { %v54_v44 = vpop.permute.xlu1 %53  ;;  %v130_v33 = vmul.f32 %v123_v50, %v114_v43  ;;  %v205_v43 = vld [vmem:[%s1100_s3 + $0x8] sm:$0xff] }
  0x8b   :  { %v83_v7 = vmul.f32 %v79_v51, %v54_v44 }
  0x8e   :  { %v39_v48 = vpop.permute.xlu0 %38 }
  0x8f   :  { %v102_v49 = vpop.permute.xlu1 %101  ;;  %v80_v53 = vmul.f32 %v79_v51, %v39_v48 }
  0x90   :  { %v127_v4 = vmul.f32 %v123_v50, %v102_v49  ;;  %v206_v49 = vld [vmem:[%s1100_s3 + $0x10] sm:$0xff] }
  0x91   :  { %v132_v59 = vadd.f32 %v124_v55, %v80_v53  ;;  %v210_v53 = vld [vmem:[%s1100_s3 + $0x30] sm:$0xff]  ;;  %v212_v55 = vld [vmem:[%s1100_s3 + $0x40] sm:$0xff] }
  0x92   :  { %v44_v52 = vpop.permute.xlu0 %43  ;;  %v135_v11 = vadd.f32 %v127_v4, %v83_v7 }
  0x93   :  { %v81_v56 = vmul.f32 %v79_v51, %v44_v52  ;;  %v209_v52 = vld [vmem:[%s1100_s3 + $0x28] sm:$0xff] }
  0x94   :  { %v151_v54 = vpop.permute.xlu1 %150 }
  0x95   :  { %v188_v61 = vadd.f32 %v151_v54, %v132_v59  ;;  %v133_v62 = vadd.f32 %v125_v58, %v81_v56  ;;  %v211_v54 = vld [vmem:[%s1100_s3 + $0x38] sm:$0xff]  ;;  %v213_v56 = vld [vmem:[%s1100_s3 + $0x48] sm:$0xff]  ;;  %v216_v59 = vld [vmem:[%s1100_s3 + $0x60] sm:$0xff] }
  0x96   :  { %v49_v57 = vpop.permute.xlu0 %48  ;;  %v215_v58 = vld [vmem:[%s1100_s3 + $0x58] sm:$0xff] }
  0x97   :  { %v196_v2 = vmax.f32 %v188_v61, 0.0  ;;  %v82_v8 = vmul.f32 %v79_v51, %v49_v57  ;;  %v214_v57 = vld [vmem:[%s1100_s3 + $0x50] sm:$0xff] }
  0x98   :  { %v59_v60 = vpop.permute.xlu1 %58  ;;  %v218_v61 = vld [vmem:[%s1100_s3 + $0x70] sm:$0xff] }
  0x99   :  { %v134_v13 = vadd.f32 %v126_v6, %v82_v8  ;;  %v84_v24 = vmul.f32 %v79_v51, %v59_v60  ;;  %v217_v60 = vld [vmem:[%s1100_s3 + $0x68] sm:$0xff] }
  0x9a   :  { %v156_v63 = vpop.permute.xlu0 %155 }
  0x9b   :  { %v189_v0 = vadd.f32 %v156_v63, %v133_v62  ;;  %v136_v29 = vadd.f32 %v128_v23, %v84_v24  ;;  %v219_v62 = vld [vmem:[%s1100_s3 + $0x78] sm:$0xff]  ;;  %v526_v63 = vld [vmem:[%s1102_s5] sm:$0xff] }
  0x9c   :  { %v64_v1 = vpop.permute.xlu1 %63  ;;  %771 = vmatprep.mubr.f32.mxu1 %v526_v63 }
  0x9d   :  { %v197_v3 = vmax.f32 %v189_v0, 0.0  ;;  %v85_v22 = vmul.f32 %v79_v51, %v64_v1 }
  0x9e   :  { %v166_v10 = vpop.permute.xlu0 %165 }
  0x9f   :  { %v774_v5 = vpack.c.bf16 %v197_v3, %v196_v2  ;;  %v191_v12 = vadd.f32 %v166_v10, %v135_v11 }
  0xa1   :  { %v110_v9 = vpop.permute.xlu1 %109  ;;  %775 = vmatprep.subr.bf16.mxu0 %v774_v5  ;;  %v199_v16 = vmax.f32 %v191_v12, 0.0 }
  0xa2   :  { %777 = vmatpush3.bf16.msra.mxu0 %v774_v5  ;;  %v129_v21 = vmul.f32 %v123_v50, %v110_v9  ;;  %v176_v27 = vpop.permute.xlu0 %175 }
  0xa4   :  { %v137_v25 = vadd.f32 %v129_v21, %v85_v22 }
  0xa6   :  { %v161_v14 = vpop.permute.xlu1 %160  ;;  %v193_v28 = vadd.f32 %v176_v27, %v137_v25  ;;  %v239_v1 = vpop.permute.xlu0 %238 }
  0xa7   :  { %v190_v15 = vadd.f32 %v161_v14, %v134_v13 }
  0xa8   :  { %v201_v34 = vmax.f32 %v193_v28, 0.0 }
  0xa9   :  { %v198_v17 = vmax.f32 %v190_v15, 0.0 }
  0xaa   :  { %v69_v18 = vpop.permute.xlu1 %68  ;;  %v249_v3 = vpop.permute.xlu0 %248 }
  0xab   :  { %v778_v19 = vpack.c.bf16 %v199_v16, %v198_v17  ;;  %v86_v31 = vmul.f32 %v79_v51, %v69_v18 }
  0xad   :  { %779 = vmatprep.subr.bf16.mxu0 %v778_v19  ;;  %v138_v40 = vadd.f32 %v130_v33, %v86_v31 }
  0xae   :  { %v74_v20 = vpop.permute.xlu1 %73  ;;  %781 = vmatpush3.bf16.msra.mxu0 %v778_v19  ;;  %v259_v5 = vpop.permute.xlu0 %258 }
  0xaf   :  { %v87_v38 = vmul.f32 %v79_v51, %v74_v20  ;;  %v208_v51 = vld [vmem:[%s1100_s3 + $0x20] sm:$0xff] }
  0xb2   :  { %v269_v14 = vpop.permute.xlu0 %268 }
  0xb3   :  { %v118_v26 = vpop.permute.xlu1 %117 }
  0xb4   :  { %v131_v35 = vmul.f32 %v123_v50, %v118_v26  ;;  %v207_v50 = vld [vmem:[%s1100_s3 + $0x18] sm:$0xff] }
  0xb6   :  { %v139_v41 = vadd.f32 %v131_v35, %v87_v38  ;;  %v279_v27 = vpop.permute.xlu0 %278 }
  0xb8   :  { %v171_v30 = vpop.permute.xlu1 %170 }
  0xb9   :  { %v192_v32 = vadd.f32 %v171_v30, %v136_v29 }
  0xbb   :  { %v200_v36 = vmax.f32 %v192_v32, 0.0 }
  0xbc   :  { %v181_v37 = vpop.permute.xlu1 %180 }
  0xbd   :  { %v782_v39 = vpack.c.bf16 %v201_v34, %v200_v36  ;;  %v194_v42 = vadd.f32 %v181_v37, %v138_v40 }
  0xbf   :  { %783 = vmatprep.subr.bf16.mxu0 %v782_v39  ;;  %v202_v46 = vmax.f32 %v194_v42, 0.0 }
  0xc0   :  { %v186_v44 = vpop.permute.xlu1 %185  ;;  %785 = vmatpush3.bf16.msra.mxu0 %v782_v39  ;;  %v289_v39 = vpop.permute.xlu0 %288 }
  0xc1   :  { %v195_v45 = vadd.f32 %v186_v44, %v139_v41 }
  0xc3   :  { %v203_v47 = vmax.f32 %v195_v45, 0.0 }
  0xc4   :  { %v244_v0 = vpop.permute.xlu1 %243 }
  0xc5   :  { %v786_v48 = vpack.c.bf16 %v203_v47, %v202_v46 }
  0xc7   :  { %787 = vmatprep.subr.bf16.mxu0 %v786_v48 }
  0xc8   :  { %789 = vmatpush3.bf16.msra.mxu0 %v786_v48  ;;  %v254_v2 = vpop.permute.xlu1 %253 }
  0xcb   :  { %716 = vmatmul.mubr.msk.f32.vlgmr.msra.gmra.mrb[0].mxu0 %vm316_vm0, %v205_v43 }
  0xcc   :  { %718 = vmatprep.mubr.msk.f32.mxu0 %vm316_vm0, %v206_v49  ;;  %v264_v4 = vpop.permute.xlu1 %263 }
  0xcf   :  { %719 = vmatmul.mubr.msk.f32.gmra.mrb[2].mxu0 %vm316_vm0, %v207_v50 }
  0xd0   :  { %721 = vmatprep.mubr.msk.f32.mxu0 %vm316_vm0, %v208_v51  ;;  %v274_v11 = vpop.permute.xlu1 %273 }
  0xd3   :  { %722 = vmatmul.mubr.msk.f32.gmra.mrb[4].mxu0 %vm316_vm0, %v209_v52  ;;  %v299_v52 = vpop.permute.xlu0 %298 }
  0xd4   :  { %724 = vmatprep.mubr.msk.f32.mxu0 %vm316_vm0, %v210_v53  ;;  %v284_v24 = vpop.permute.xlu1 %283 }
  0xd7   :  { %725 = vmatmul.mubr.msk.f32.gmra.mrb[6].mxu0 %vm316_vm0, %v211_v54 }
  0xd8   :  { %727 = vmatprep.mubr.msk.f32.mxu0 %vm316_vm0, %v212_v55  ;;  %v294_v36 = vpop.permute.xlu1 %293 }
  0xdb   :  { %728 = vmatmul.mubr.msk.f32.gmra.mrb[8].mxu0 %vm316_vm0, %v213_v56 }
  0xdc   :  { %730 = vmatprep.mubr.msk.f32.mxu0 %vm316_vm0, %v214_v57  ;;  %v304_v49 = vpop.permute.xlu1 %303 }
  0xdf   :  { %731 = vmatmul.mubr.msk.f32.gmra.mrb[10].mxu0 %vm316_vm0, %v215_v58 }
  0xe0   :  { %733 = vmatprep.mubr.msk.f32.mxu0 %vm316_vm0, %v216_v59 }
  0xe3   :  { %734 = vmatmul.mubr.msk.f32.gmra.mrb[12].mxu0 %vm316_vm0, %v217_v60 }
  0xe4   :  { %736 = vmatprep.mubr.msk.f32.mxu0 %vm316_vm0, %v218_v61  ;;  %v314_v61 = vpop.permute.xlu1 %313 }
  0xe7   :  { %737 = vmatmul.mubr.msk.f32.gmra.mrb[14].mxu0 %vm316_vm0, %v219_v62 }
 0x19e   :  { %v717_v6 = vpop.f32.mrb[0].mxu0 }
 0x19f   :  { %v437_v7 = vadd.f32 %v717_v6, %v244_v0  ;;  %v431_v8 = vpop.f32.mrb[1].mxu0  ;;  %v309_v0 = vpop.permute.xlu0 %308 }
 0x1a0   :  { %v432_v9 = vadd.f32 %v431_v8, %v239_v1  ;;  %v527_v8 = vld [vmem:[%s1102_s5 + $0x8] sm:$0xff]  ;;  %s841_s5 = scalar_lea.vmem %s631_s27, 256 }
 0x1a1   :  { %v511_v10 = vmax.f32 %v437_v7, 0.0  ;;  %p842_p0 = scmp.ne.s32.totalorder %s631_s27, %s841_s5  ;;  %p847_p2 = scmp.lt.s32.totalorder %s841_s5, %s841_s5 }
 0x1a2   :  { %v510_v12 = vmax.f32 %v432_v9, 0.0  ;;  %v720_v13 = vpop.f32.mrb[2].mxu0  ;;  %v538_v9 = vpop.permute.xlu1 %537 }
 0x1a3   :  { %v447_v15 = vadd.f32 %v720_v13, %v254_v2  ;;  %v441_v16 = vpop.f32.mrb[3].mxu0  ;;  %p848_p3 = por %p847_p2, %p846_p1 }
 0x1a4   :  { %v442_v17 = vadd.f32 %v441_v16, %v249_v3  ;;  %v790_v18 = vpack.c.bf16 %v511_v10, %v510_v12 }
 0x1a5   :  { %v513_v19 = vmax.f32 %v447_v15, 0.0  ;;  %p849_p4 = pnand %p848_p3, %p842_p0 }
 0x1a6   :  { %v512_v20 = vmax.f32 %v442_v17, 0.0  ;;  %v723_v21 = vpop.f32.mrb[4].mxu0  ;;  %791 = vmatprep.subr.bf16.mxu1 %v790_v18 }
 0x1a7   :  { %v457_v22 = vadd.f32 %v723_v21, %v264_v4  ;;  %v451_v23 = vpop.f32.mrb[5].mxu0  ;;  %793 = vmatpush3.bf16.msra.mxu1 %v790_v18 }
 0x1a8   :  { %v794_v25 = vpack.c.bf16 %v513_v19, %v512_v20  ;;  %v452_v26 = vadd.f32 %v451_v23, %v259_v5 }
 0x1a9   :  { %v515_v28 = vmax.f32 %v457_v22, 0.0 }
 0x1aa   :  { %v514_v29 = vmax.f32 %v452_v26, 0.0  ;;  %v726_v30 = vpop.f32.mrb[6].mxu0  ;;  %795 = vmatprep.subr.bf16.mxu1 %v794_v25 }
 0x1ab   :  { %v467_v31 = vadd.f32 %v726_v30, %v274_v11  ;;  %v461_v32 = vpop.f32.mrb[7].mxu0  ;;  %797 = vmatpush3.bf16.msra.mxu1 %v794_v25  ;;  %v533_v11 = vpop.permute.xlu0 %532 }
 0x1ac   :  { %v798_v33 = vpack.c.bf16 %v515_v28, %v514_v29  ;;  %v462_v34 = vadd.f32 %v461_v32, %v269_v14 }
 0x1ad   :  { %v517_v35 = vmax.f32 %v467_v31, 0.0 }
 0x1ae   :  { %v516_v37 = vmax.f32 %v462_v34, 0.0  ;;  %v729_v38 = vpop.f32.mrb[8].mxu0  ;;  %799 = vmatprep.subr.bf16.mxu1 %v798_v33 }
 0x1af   :  { %v477_v40 = vadd.f32 %v729_v38, %v284_v24  ;;  %v471_v42 = vpop.f32.mrb[9].mxu0  ;;  %801 = vmatpush3.bf16.msra.mxu1 %v798_v33 }
 0x1b0   :  { %v802_v41 = vpack.c.bf16 %v517_v35, %v516_v37  ;;  %v472_v44 = vadd.f32 %v471_v42, %v279_v27 }
 0x1b1   :  { %v519_v45 = vmax.f32 %v477_v40, 0.0 }
 0x1b2   :  { %v518_v46 = vmax.f32 %v472_v44, 0.0  ;;  %v732_v47 = vpop.f32.mrb[10].mxu0  ;;  %803 = vmatprep.subr.bf16.mxu1 %v802_v41 }
 0x1b3   :  { %v487_v48 = vadd.f32 %v732_v47, %v294_v36  ;;  %v481_v43 = vpop.f32.mrb[11].mxu0  ;;  %805 = vmatpush3.bf16.msra.mxu1 %v802_v41 }
 0x1b4   :  { %v806_v50 = vpack.c.bf16 %v519_v45, %v518_v46  ;;  %v482_v51 = vadd.f32 %v481_v43, %v289_v39 }
 0x1b5   :  { %v521_v53 = vmax.f32 %v487_v48, 0.0 }
 0x1b6   :  { %v520_v54 = vmax.f32 %v482_v51, 0.0  ;;  %v735_v55 = vpop.f32.mrb[12].mxu0  ;;  %807 = vmatprep.subr.bf16.mxu1 %v806_v50 }
 0x1b7   :  { %v497_v56 = vadd.f32 %v735_v55, %v304_v49  ;;  %v491_v57 = vpop.f32.mrb[13].mxu0  ;;  %809 = vmatpush3.bf16.msra.mxu1 %v806_v50 }
 0x1b8   :  { %v810_v58 = vpack.c.bf16 %v521_v53, %v520_v54  ;;  %v492_v59 = vadd.f32 %v491_v57, %v299_v52 }
 0x1b9   :  { %v523_v60 = vmax.f32 %v497_v56, 0.0 }
 0x1ba   :  { %v522_v62 = vmax.f32 %v492_v59, 0.0  ;;  %v738_v63 = vpop.f32.mrb[14].mxu0  ;;  %811 = vmatprep.subr.bf16.mxu1 %v810_v58 }
 0x1bb   :  { %v507_v1 = vadd.f32 %v738_v63, %v314_v61  ;;  %v501_v2 = vpop.f32.mrb[15].mxu0  ;;  %813 = vmatpush3.bf16.msra.mxu1 %v810_v58 }
 0x1bc   :  { %v814_v3 = vpack.c.bf16 %v523_v60, %v522_v62  ;;  %v502_v4 = vadd.f32 %v501_v2, %v309_v0 }
 0x1bd   :  { %v525_v5 = vmax.f32 %v507_v1, 0.0 }
 0x1be   :  { %v524_v6 = vmax.f32 %v502_v4, 0.0  ;;  %815 = vmatprep.subr.bf16.mxu1 %v814_v3 }
 0x1bf   :  { %817 = vmatpush3.bf16.msra.mxu1 %v814_v3 }
 0x1c0   :  { %v818_v7 = vpack.c.bf16 %v525_v5, %v524_v6 }
 0x1c2   :  { %819 = vmatprep.subr.bf16.mxu1 %v818_v7 }
 0x1c3   :  { %821 = vmatpush3.bf16.msra.mxu1 %v818_v7 }
 0x1c6   :  { %772 = vmatmul.mubr.f32.vlgmr.msra.gmra.mrb[0].mxu1 %v527_v8 }
 0x299   :  { %v773_v10 = vpop.f32.mrb[0].mxu1 }
 0x29a   :  { %v612_v12 = vadd.f32 %v773_v10, %v538_v9  ;;  %v606_v13 = vpop.f32.mrb[1].mxu1 }
 0x29b   :  { %v607_v14 = vadd.f32 %v606_v13, %v533_v11 }
 0x29c   :  { %v616_v15 = vmul.f32 0.5, %v612_v12 }
 0x29d   :  { %v615_v16 = vmul.f32 0.5, %v607_v14 }
 0x29e   :  { %837 = vtanh.f32 %v616_v15 }
 0x29f   :  { %839 = vtanh.f32 %v615_v16 }
 0x2a8   :  { %v838_v17 = vpop.eup %837 }
 0x2a9   :  { %v840_v18 = vpop.eup %839  ;;  %v620_v19 = vadd.f32 1.0, %v838_v17 }
 0x2aa   :  { %v619_v20 = vadd.f32 1.0, %v840_v18 }
 0x2ab   :  { %v622_v21 = vmul.f32 0.5, %v620_v19 }
 0x2ac   :  { %v621_v22 = vmul.f32 0.5, %v619_v20 }
 0x2ad   :  { %624 = vst [vmem:[#allocation2 + $0x8] sm:$0xff] %v622_v21 }
 0x2ae   :  { %623 = vst [vmem:[#allocation2] sm:$0xff] %v621_v22 }
 0x2af   :  { %852 = shalt.err (!%p849_p4)
}
 0x2b0   :  { %s853_s30 = scalar_lea.hbm %s1104_s7, 256 }
 0x2b1   :  { %p854_p5 = scmp.ne.s32.totalorder %s1104_s7, %s853_s30  ;;  %p857_p6 = scmp.lt.u32.totalorder %s853_s30, %s1104_s7 }
 0x2b3   :  { %p859_p7 = pnand %p857_p6, %p854_p5 }
 0x2b5   :  { %862 = shalt.err (!%p859_p7)
}
 0x2b6   :  { %s868_s11 = smov 128   ;;  %s869_s12 = smov 8  }
 0x2b7   :  { %636 = dma.vmem_to_hbm [thread:$0]  %s631_s27, 256, %s1104_s7, [#allocation3], %s868_s11, %s868_s11, %s869_s12  }
 0x2b8   :  { %863 = dma.done.wait [#allocation3], 256  }
 0x2b9   :  { %864 = vsyncadd [#allocation3], 4294967040 }
 0x2ba   :  { %640 = vsyncpa [#allocation3], 1 }

</bundles_post_ra>
